<compile_context>
chip_gen: v5e
topology: v5e:2x2
jax: 0.10.0
libtpu: 0.0.40
codegen_flags: <defaults>
</compile_context>

<pallas_src>
import functools

import jax
import jax.numpy as jnp
from jax import lax
from jax.experimental import pallas as pl
from jax.experimental.pallas import tpu as pltpu


def _mha_kernel(
    q_ref, k_ref, v_ref,          # (1, Lq, Dm), (1, Lk, Dm), (1, Lv, Dm)
    wq_ref, bq_ref,               # (Dm, H*dk), (1, H*dk)
    wk_ref, bk_ref,               # (Dm, H*dk), (1, H*dk)
    wv_ref, bv_ref,               # (Dm, H*dv), (1, H*dv)
    wo_ref, bo_ref,               # (H*dv, Dm), (1, Dm)
    g_ref, be_ref,                # (1, Dm), (1, Dm)
    out_ref,                      # out: (1, Lq, Dm)
    attn_ref,                     # out: (1, H, Lq, Lk)
    *, n_head, d_k, d_v, temperature, eps,
):
    x_q = q_ref[0]                # (Lq, Dm)
    x_k = k_ref[0]                # (Lk, Dm)
    x_v = v_ref[0]                # (Lv, Dm)
    Lq, Dm = x_q.shape

    # ---- fused QKV projections (single wide matmuls on the MXU) -------------
    Q = jnp.dot(x_q, wq_ref[...], preferred_element_type=jnp.float32) + bq_ref[...]
    K = jnp.dot(x_k, wk_ref[...], preferred_element_type=jnp.float32) + bk_ref[...]
    V = jnp.dot(x_v, wv_ref[...], preferred_element_type=jnp.float32) + bv_ref[...]

    inv_temp = 1.0 / temperature

    # fc(concat_h ctx_h) + bo  ==  sum_h ctx_h @ Wo[h*dv:(h+1)*dv, :] + bo
    acc = jnp.zeros((Lq, Dm), jnp.float32) + bo_ref[...]

    for h in range(n_head):                         # static, small head count
        Qh = Q[:, h * d_k:(h + 1) * d_k]            # (Lq, dk)
        Kh = K[:, h * d_k:(h + 1) * d_k]            # (Lk, dk)
        Vh = V[:, h * d_v:(h + 1) * d_v]            # (Lk, dv)

        # scores = Qh @ Kh^T / temperature   (contract over d_k)
        s = lax.dot_general(Qh, Kh, (((1,), (1,)), ((), ())),
                            preferred_element_type=jnp.float32) * inv_temp

        # softmax(dim=-1), numerically stable
        m = jnp.max(s, axis=-1, keepdims=True)
        p = jnp.exp(s - m)
        attn = p / jnp.sum(p, axis=-1, keepdims=True)
        # reference's post-softmax renormalization (mask=None path)
        attn = attn / (jnp.sum(attn, axis=-1, keepdims=True) + 1e-8)
        # TODO(synk): attention dropout is identity in eval mode.
        attn_ref[0, h] = attn

        ctx_h = jnp.dot(attn, Vh, preferred_element_type=jnp.float32)       # (Lq, dv)
        acc = acc + jnp.dot(ctx_h, wo_ref[h * d_v:(h + 1) * d_v, :],
                            preferred_element_type=jnp.float32)

    # ---- residual + LayerNorm(d_model) ---------------------------------------
    out = acc + x_q
    mu = jnp.mean(out, axis=-1, keepdims=True)
    var = jnp.mean((out - mu) ** 2, axis=-1, keepdims=True)
    out = (out - mu) * lax.rsqrt(var + eps) * g_ref[...] + be_ref[...]
    out_ref[0] = out.astype(out_ref.dtype)


def multi_head_attention(q, k, v, params, *, n_head, d_k, d_v, eps=1e-5):
    """q,k,v: (B, L, d_model) f32.  Returns (output (B, Lq, d_model),
    attn (n_head*B, Lq, Lk)) matching the PyTorch module in eval mode."""
    B, Lq, Dm = q.shape
    _, Lk, _ = k.shape
    _, Lv, _ = v.shape
    assert Lk == Lv

    # nn.Linear stores (out, in); transpose so each projection is x @ W.
    wq = params["w_qs_w"].T                        # (Dm, H*dk)
    bq = params["w_qs_b"].reshape(1, n_head * d_k)
    wk = params["w_ks_w"].T
    bk = params["w_ks_b"].reshape(1, n_head * d_k)
    wv = params["w_vs_w"].T                        # (Dm, H*dv)
    bv = params["w_vs_b"].reshape(1, n_head * d_v)
    wo = params["fc_w"].T                          # (H*dv, Dm)
    bo = params["fc_b"].reshape(1, Dm)
    g = params["ln_g"].reshape(1, Dm)
    be = params["ln_b"].reshape(1, Dm)

    kernel = functools.partial(
        _mha_kernel, n_head=n_head, d_k=d_k, d_v=d_v,
        temperature=float(d_k) ** 0.5, eps=eps)

    def full(shape):
        return pl.BlockSpec(shape, lambda b: (0,) * len(shape))

    out, attn = pl.pallas_call(
        kernel,
        out_shape=(
            jax.ShapeDtypeStruct((B, Lq, Dm), jnp.float32),
            jax.ShapeDtypeStruct((B, n_head, Lq, Lk), jnp.float32),
        ),
        grid_spec=pltpu.PrefetchScalarGridSpec(
            num_scalar_prefetch=0,
            grid=(B,),
            in_specs=[
                pl.BlockSpec((1, Lq, Dm), lambda b: (b, 0, 0)),
                pl.BlockSpec((1, Lk, Dm), lambda b: (b, 0, 0)),
                pl.BlockSpec((1, Lv, Dm), lambda b: (b, 0, 0)),
                full((Dm, n_head * d_k)), full((1, n_head * d_k)),
                full((Dm, n_head * d_k)), full((1, n_head * d_k)),
                full((Dm, n_head * d_v)), full((1, n_head * d_v)),
                full((n_head * d_v, Dm)), full((1, Dm)),
                full((1, Dm)), full((1, Dm)),
            ],
            out_specs=[
                pl.BlockSpec((1, Lq, Dm), lambda b: (b, 0, 0)),
                pl.BlockSpec((1, n_head, Lq, Lk), lambda b: (b, 0, 0, 0)),
            ],
        ),
        compiler_params=pltpu.CompilerParams(
            dimension_semantics=("parallel",)),      # v7x: shard batch over 2 TCs
    )(q, k, v, wq, bq, wk, bk, wv, bv, wo, bo, g, be)

    # PyTorch layout: attn is (n_head * B, Lq, Lk) with index h * B + b.
    attn = jnp.transpose(attn, (1, 0, 2, 3)).reshape(n_head * B, Lq, Lk)
    return out, attn


def _mha_reference(q, k, v, params, *, n_head, d_k, d_v, eps=1e-5):
    """Pure-JAX replica of the PyTorch module (eval, mask=None)."""
    B, Lq, Dm = q.shape
    Lk = k.shape[1]
    Q = q @ params["w_qs_w"].T + params["w_qs_b"]
    K = k @ params["w_ks_w"].T + params["w_ks_b"]
    V = v @ params["w_vs_w"].T + params["w_vs_b"]
    Q = Q.reshape(B, Lq, n_head, d_k).transpose(2, 0, 1, 3).reshape(-1, Lq, d_k)
    K = K.reshape(B, Lk, n_head, d_k).transpose(2, 0, 1, 3).reshape(-1, Lk, d_k)
    V = V.reshape(B, Lk, n_head, d_v).transpose(2, 0, 1, 3).reshape(-1, Lk, d_v)
    attn = jnp.einsum("bqd,bkd->bqk", Q, K) / (float(d_k) ** 0.5)
    attn = jax.nn.softmax(attn, axis=2)
    attn = attn / (jnp.sum(attn, axis=2, keepdims=True) + 1e-8)
    out = jnp.einsum("bqk,bkd->bqd", attn, V)
    out = out.reshape(n_head, B, Lq, d_v).transpose(1, 2, 0, 3).reshape(B, Lq, n_head * d_v)
    out = out @ params["fc_w"].T + params["fc_b"]
    out = out + q
    mu = out.mean(-1, keepdims=True)
    var = ((out - mu) ** 2).mean(-1, keepdims=True)
    out = (out - mu) / jnp.sqrt(var + eps) * params["ln_g"] + params["ln_b"]
    return out, attn


def init_params(key, n_head, d_model, d_k, d_v):
    ks = jax.random.split(key, 7)
    std_qk = (2.0 / (d_model + d_k)) ** 0.5
    std_v = (2.0 / (d_model + d_v)) ** 0.5
    std_fc = (2.0 / (n_head * d_v + d_model)) ** 0.5
    return {
        "w_qs_w": std_qk * jax.random.normal(ks[0], (n_head * d_k, d_model), jnp.float32),
        "w_qs_b": 0.02 * jax.random.normal(ks[1], (n_head * d_k,), jnp.float32),
        "w_ks_w": std_qk * jax.random.normal(ks[2], (n_head * d_k, d_model), jnp.float32),
        "w_ks_b": 0.02 * jax.random.normal(ks[3], (n_head * d_k,), jnp.float32),
        "w_vs_w": std_v * jax.random.normal(ks[4], (n_head * d_v, d_model), jnp.float32),
        "w_vs_b": 0.02 * jax.random.normal(ks[5], (n_head * d_v,), jnp.float32),
        "fc_w": std_fc * jax.random.normal(ks[6], (d_model, n_head * d_v), jnp.float32),
        "fc_b": jnp.zeros((d_model,), jnp.float32),
        "ln_g": jnp.ones((d_model,), jnp.float32),
        "ln_b": jnp.zeros((d_model,), jnp.float32),
    }


if __name__ == "__main__":
    B, L = 2, 16
    d_model, n_head, d_k, d_v = 32, 2, 16, 16

    key = jax.random.PRNGKey(0)
    kq, kk, kv, kp = jax.random.split(key, 4)
    q = jax.random.normal(kq, (B, L, d_model), jnp.float32)
    k = jax.random.normal(kk, (B, L, d_model), jnp.float32)
    v = jax.random.normal(kv, (B, L, d_model), jnp.float32)
    params = init_params(kp, n_head, d_model, d_k, d_v)

    fn = jax.jit(functools.partial(
        multi_head_attention, n_head=n_head, d_k=d_k, d_v=d_v))
    out, attn = fn(q, k, v, params)
    jax.block_until_ready((out, attn))

    assert out.shape == (B, L, d_model)
    assert attn.shape == (n_head * B, L, L)

    ref_out, ref_attn = _mha_reference(q, k, v, params,
                                       n_head=n_head, d_k=d_k, d_v=d_v)
    assert jnp.allclose(out, ref_out, atol=1e-3, rtol=1e-3)
    assert jnp.allclose(attn, ref_attn, atol=1e-3, rtol=1e-3)

    print("KERNEL_OK")
</pallas_src>

<mosaic_0001>
module attributes {stable_mosaic.version = 11 : i64} {
  func.func @_mha_kernel(%arg0: i32, %arg1: memref<1x16x32xf32, #tpu.memory_space<vmem>>, %arg2: memref<1x16x32xf32, #tpu.memory_space<vmem>>, %arg3: memref<1x16x32xf32, #tpu.memory_space<vmem>>, %arg4: memref<32x32xf32, #tpu.memory_space<vmem>>, %arg5: memref<1x32xf32, #tpu.memory_space<vmem>>, %arg6: memref<32x32xf32, #tpu.memory_space<vmem>>, %arg7: memref<1x32xf32, #tpu.memory_space<vmem>>, %arg8: memref<32x32xf32, #tpu.memory_space<vmem>>, %arg9: memref<1x32xf32, #tpu.memory_space<vmem>>, %arg10: memref<32x32xf32, #tpu.memory_space<vmem>>, %arg11: memref<1x32xf32, #tpu.memory_space<vmem>>, %arg12: memref<1x32xf32, #tpu.memory_space<vmem>>, %arg13: memref<1x32xf32, #tpu.memory_space<vmem>>, %arg14: memref<1x16x32xf32, #tpu.memory_space<vmem>>, %arg15: memref<1x2x16x16xf32, #tpu.memory_space<vmem>>) attributes {dimension_semantics = [#tpu.dimension_semantics<parallel>], iteration_bounds = array<i64: 2>, scalar_prefetch = 0 : i64, scratch_operands = 0 : i64, tpu.core_type = #tpu.core_type<tc>, window_params = [{transform_indices = @transform_0, window_bounds = array<i64: 1, 16, 32>}, {transform_indices = @transform_1, window_bounds = array<i64: 1, 16, 32>}, {transform_indices = @transform_2, window_bounds = array<i64: 1, 16, 32>}, {pipeline_mode = #tpu.pipeline_mode<synchronous>, transform_indices = @transform_3, window_bounds = array<i64: 32, 32>}, {pipeline_mode = #tpu.pipeline_mode<synchronous>, transform_indices = @transform_4, window_bounds = array<i64: 1, 32>}, {pipeline_mode = #tpu.pipeline_mode<synchronous>, transform_indices = @transform_5, window_bounds = array<i64: 32, 32>}, {pipeline_mode = #tpu.pipeline_mode<synchronous>, transform_indices = @transform_6, window_bounds = array<i64: 1, 32>}, {pipeline_mode = #tpu.pipeline_mode<synchronous>, transform_indices = @transform_7, window_bounds = array<i64: 32, 32>}, {pipeline_mode = #tpu.pipeline_mode<synchronous>, transform_indices = @transform_8, window_bounds = array<i64: 1, 32>}, {pipeline_mode = #tpu.pipeline_mode<synchronous>, transform_indices = @transform_9, window_bounds = array<i64: 32, 32>}, {pipeline_mode = #tpu.pipeline_mode<synchronous>, transform_indices = @transform_10, window_bounds = array<i64: 1, 32>}, {pipeline_mode = #tpu.pipeline_mode<synchronous>, transform_indices = @transform_11, window_bounds = array<i64: 1, 32>}, {pipeline_mode = #tpu.pipeline_mode<synchronous>, transform_indices = @transform_12, window_bounds = array<i64: 1, 32>}, {transform_indices = @transform_13, window_bounds = array<i64: 1, 16, 32>}, {transform_indices = @transform_14, window_bounds = array<i64: 1, 2, 16, 16>}]} {
    %c0 = arith.constant 0 : index
    %c0_0 = arith.constant 0 : index
    %c0_1 = arith.constant 0 : index
    %0 = vector.load %arg1[%c0, %c0_0, %c0_1] : memref<1x16x32xf32, #tpu.memory_space<vmem>>, vector<1x16x32xf32>
    %1 = vector.shape_cast %0 : vector<1x16x32xf32> to vector<16x32xf32>
    %c0_2 = arith.constant 0 : index
    %c0_3 = arith.constant 0 : index
    %c0_4 = arith.constant 0 : index
    %2 = vector.load %arg2[%c0_2, %c0_3, %c0_4] : memref<1x16x32xf32, #tpu.memory_space<vmem>>, vector<1x16x32xf32>
    %3 = vector.shape_cast %2 : vector<1x16x32xf32> to vector<16x32xf32>
    %c0_5 = arith.constant 0 : index
    %c0_6 = arith.constant 0 : index
    %c0_7 = arith.constant 0 : index
    %4 = vector.load %arg3[%c0_5, %c0_6, %c0_7] : memref<1x16x32xf32, #tpu.memory_space<vmem>>, vector<1x16x32xf32>
    %5 = vector.shape_cast %4 : vector<1x16x32xf32> to vector<16x32xf32>
    %c0_8 = arith.constant 0 : index
    %c0_9 = arith.constant 0 : index
    %6 = vector.load %arg4[%c0_8, %c0_9] : memref<32x32xf32, #tpu.memory_space<vmem>>, vector<32x32xf32>
    %cst = arith.constant dense<0.000000e+00> : vector<16x32xf32>
    %7 = tpu.matmul %1, %6, %cst {dimension_numbers = #tpu.dot_dimension_numbers<[1], [0], [0], [1], [0, 0, 1, 1], [], []>} : vector<16x32xf32>, vector<32x32xf32>, vector<16x32xf32> -> vector<16x32xf32>
    %c0_10 = arith.constant 0 : index
    %c0_11 = arith.constant 0 : index
    %8 = vector.load %arg5[%c0_10, %c0_11] : memref<1x32xf32, #tpu.memory_space<vmem>>, vector<1x32xf32>
    %9 = vector.broadcast %8 : vector<1x32xf32> to vector<16x32xf32>
    %10 = arith.addf %7, %9 : vector<16x32xf32>
    %c0_12 = arith.constant 0 : index
    %c0_13 = arith.constant 0 : index
    %11 = vector.load %arg6[%c0_12, %c0_13] : memref<32x32xf32, #tpu.memory_space<vmem>>, vector<32x32xf32>
    %cst_14 = arith.constant dense<0.000000e+00> : vector<16x32xf32>
    %12 = tpu.matmul %3, %11, %cst_14 {dimension_numbers = #tpu.dot_dimension_numbers<[1], [0], [0], [1], [0, 0, 1, 1], [], []>} : vector<16x32xf32>, vector<32x32xf32>, vector<16x32xf32> -> vector<16x32xf32>
    %c0_15 = arith.constant 0 : index
    %c0_16 = arith.constant 0 : index
    %13 = vector.load %arg7[%c0_15, %c0_16] : memref<1x32xf32, #tpu.memory_space<vmem>>, vector<1x32xf32>
    %14 = vector.broadcast %13 : vector<1x32xf32> to vector<16x32xf32>
    %15 = arith.addf %12, %14 : vector<16x32xf32>
    %c0_17 = arith.constant 0 : index
    %c0_18 = arith.constant 0 : index
    %16 = vector.load %arg8[%c0_17, %c0_18] : memref<32x32xf32, #tpu.memory_space<vmem>>, vector<32x32xf32>
    %cst_19 = arith.constant dense<0.000000e+00> : vector<16x32xf32>
    %17 = tpu.matmul %5, %16, %cst_19 {dimension_numbers = #tpu.dot_dimension_numbers<[1], [0], [0], [1], [0, 0, 1, 1], [], []>} : vector<16x32xf32>, vector<32x32xf32>, vector<16x32xf32> -> vector<16x32xf32>
    %c0_20 = arith.constant 0 : index
    %c0_21 = arith.constant 0 : index
    %18 = vector.load %arg9[%c0_20, %c0_21] : memref<1x32xf32, #tpu.memory_space<vmem>>, vector<1x32xf32>
    %19 = vector.broadcast %18 : vector<1x32xf32> to vector<16x32xf32>
    %20 = arith.addf %17, %19 : vector<16x32xf32>
    %cst_22 = arith.constant 0.000000e+00 : f32
    %21 = vector.broadcast %cst_22 : f32 to vector<16x32xf32>
    %c0_23 = arith.constant 0 : index
    %c0_24 = arith.constant 0 : index
    %22 = vector.load %arg11[%c0_23, %c0_24] : memref<1x32xf32, #tpu.memory_space<vmem>>, vector<1x32xf32>
    %23 = vector.broadcast %22 : vector<1x32xf32> to vector<16x32xf32>
    %24 = arith.addf %21, %23 : vector<16x32xf32>
    %25 = vector.extract_strided_slice %10 {offsets = [0, 0], sizes = [16, 16], strides = [1, 1]} : vector<16x32xf32> to vector<16x16xf32>
    %26 = vector.extract_strided_slice %15 {offsets = [0, 0], sizes = [16, 16], strides = [1, 1]} : vector<16x32xf32> to vector<16x16xf32>
    %27 = vector.extract_strided_slice %20 {offsets = [0, 0], sizes = [16, 16], strides = [1, 1]} : vector<16x32xf32> to vector<16x16xf32>
    %cst_25 = arith.constant dense<0.000000e+00> : vector<16x16xf32>
    %28 = tpu.matmul %25, %26, %cst_25 {dimension_numbers = #tpu.dot_dimension_numbers<[1], [1], [0], [0], [0, 0, 1, 0], [], []>} : vector<16x16xf32>, vector<16x16xf32>, vector<16x16xf32> -> vector<16x16xf32>
    %cst_26 = arith.constant 2.500000e-01 : f32
    %29 = vector.broadcast %cst_26 : f32 to vector<16x16xf32>
    %30 = arith.mulf %28, %29 : vector<16x16xf32>
    %cst_27 = arith.constant dense<0xFF800000> : vector<16xf32>
    %31 = vector.multi_reduction <maximumf>, %30, %cst_27 [1] : vector<16x16xf32> to vector<16xf32>
    %32 = vector.shape_cast %31 : vector<16xf32> to vector<16x1xf32>
    %33 = vector.broadcast %32 : vector<16x1xf32> to vector<16x16xf32>
    %34 = arith.subf %30, %33 : vector<16x16xf32>
    %35 = math.exp %34 : vector<16x16xf32>
    %cst_28 = arith.constant dense<0.000000e+00> : vector<16xf32>
    %36 = vector.multi_reduction <add>, %35, %cst_28 [1] : vector<16x16xf32> to vector<16xf32>
    %37 = vector.shape_cast %36 : vector<16xf32> to vector<16x1xf32>
    %38 = vector.broadcast %37 : vector<16x1xf32> to vector<16x16xf32>
    %39 = arith.divf %35, %38 : vector<16x16xf32>
    %cst_29 = arith.constant dense<0.000000e+00> : vector<16xf32>
    %40 = vector.multi_reduction <add>, %39, %cst_29 [1] : vector<16x16xf32> to vector<16xf32>
    %41 = vector.shape_cast %40 : vector<16xf32> to vector<16x1xf32>
    %cst_30 = arith.constant 9.99999993E-9 : f32
    %42 = vector.broadcast %cst_30 : f32 to vector<16x1xf32>
    %43 = arith.addf %41, %42 : vector<16x1xf32>
    %44 = vector.broadcast %43 : vector<16x1xf32> to vector<16x16xf32>
    %45 = arith.divf %39, %44 : vector<16x16xf32>
    %c0_31 = arith.constant 0 : index
    %c0_32 = arith.constant 0 : index
    %c0_33 = arith.constant 0 : index
    %c0_34 = arith.constant 0 : index
    %46 = vector.load %arg15[%c0_31, %c0_32, %c0_33, %c0_34] : memref<1x2x16x16xf32, #tpu.memory_space<vmem>>, vector<1x1x16x16xf32>
    %47 = vector.shape_cast %46 : vector<1x1x16x16xf32> to vector<16x16xf32>
    %48 = vector.shape_cast %45 : vector<16x16xf32> to vector<1x1x16x16xf32>
    tpu.vector_store %arg15[%c0_31, %c0_32, %c0_33, %c0_34], %48 {strides = array<i32>} : memref<1x2x16x16xf32, #tpu.memory_space<vmem>>, vector<1x1x16x16xf32>,
    %cst_35 = arith.constant dense<0.000000e+00> : vector<16x16xf32>
    %49 = tpu.matmul %45, %27, %cst_35 {dimension_numbers = #tpu.dot_dimension_numbers<[1], [0], [0], [1], [0, 0, 1, 1], [], []>} : vector<16x16xf32>, vector<16x16xf32>, vector<16x16xf32> -> vector<16x16xf32>
    %c0_36 = arith.constant 0 : index
    %c0_37 = arith.constant 0 : index
    %50 = vector.load %arg10[%c0_36, %c0_37] : memref<32x32xf32, #tpu.memory_space<vmem>>, vector<16x32xf32>
    %cst_38 = arith.constant dense<0.000000e+00> : vector<16x32xf32>
    %51 = tpu.matmul %49, %50, %cst_38 {dimension_numbers = #tpu.dot_dimension_numbers<[1], [0], [0], [1], [0, 0, 1, 1], [], []>} : vector<16x16xf32>, vector<16x32xf32>, vector<16x32xf32> -> vector<16x32xf32>
    %52 = arith.addf %24, %51 : vector<16x32xf32>
    %53 = vector.extract_strided_slice %10 {offsets = [0, 16], sizes = [16, 16], strides = [1, 1]} : vector<16x32xf32> to vector<16x16xf32>
    %54 = vector.extract_strided_slice %15 {offsets = [0, 16], sizes = [16, 16], strides = [1, 1]} : vector<16x32xf32> to vector<16x16xf32>
    %55 = vector.extract_strided_slice %20 {offsets = [0, 16], sizes = [16, 16], strides = [1, 1]} : vector<16x32xf32> to vector<16x16xf32>
    %cst_39 = arith.constant dense<0.000000e+00> : vector<16x16xf32>
    %56 = tpu.matmul %53, %54, %cst_39 {dimension_numbers = #tpu.dot_dimension_numbers<[1], [1], [0], [0], [0, 0, 1, 0], [], []>} : vector<16x16xf32>, vector<16x16xf32>, vector<16x16xf32> -> vector<16x16xf32>
    %cst_40 = arith.constant 2.500000e-01 : f32
    %57 = vector.broadcast %cst_40 : f32 to vector<16x16xf32>
    %58 = arith.mulf %56, %57 : vector<16x16xf32>
    %cst_41 = arith.constant dense<0xFF800000> : vector<16xf32>
    %59 = vector.multi_reduction <maximumf>, %58, %cst_41 [1] : vector<16x16xf32> to vector<16xf32>
    %60 = vector.shape_cast %59 : vector<16xf32> to vector<16x1xf32>
    %61 = vector.broadcast %60 : vector<16x1xf32> to vector<16x16xf32>
    %62 = arith.subf %58, %61 : vector<16x16xf32>
    %63 = math.exp %62 : vector<16x16xf32>
    %cst_42 = arith.constant dense<0.000000e+00> : vector<16xf32>
    %64 = vector.multi_reduction <add>, %63, %cst_42 [1] : vector<16x16xf32> to vector<16xf32>
    %65 = vector.shape_cast %64 : vector<16xf32> to vector<16x1xf32>
    %66 = vector.broadcast %65 : vector<16x1xf32> to vector<16x16xf32>
    %67 = arith.divf %63, %66 : vector<16x16xf32>
    %cst_43 = arith.constant dense<0.000000e+00> : vector<16xf32>
    %68 = vector.multi_reduction <add>, %67, %cst_43 [1] : vector<16x16xf32> to vector<16xf32>
    %69 = vector.shape_cast %68 : vector<16xf32> to vector<16x1xf32>
    %cst_44 = arith.constant 9.99999993E-9 : f32
    %70 = vector.broadcast %cst_44 : f32 to vector<16x1xf32>
    %71 = arith.addf %69, %70 : vector<16x1xf32>
    %72 = vector.broadcast %71 : vector<16x1xf32> to vector<16x16xf32>
    %73 = arith.divf %67, %72 : vector<16x16xf32>
    %c0_45 = arith.constant 0 : index
    %c1 = arith.constant 1 : index
    %c0_46 = arith.constant 0 : index
    %c0_47 = arith.constant 0 : index
    %74 = vector.load %arg15[%c0_45, %c1, %c0_46, %c0_47] : memref<1x2x16x16xf32, #tpu.memory_space<vmem>>, vector<1x1x16x16xf32>
    %75 = vector.shape_cast %74 : vector<1x1x16x16xf32> to vector<16x16xf32>
    %76 = vector.shape_cast %73 : vector<16x16xf32> to vector<1x1x16x16xf32>
    tpu.vector_store %arg15[%c0_45, %c1, %c0_46, %c0_47], %76 {strides = array<i32>} : memref<1x2x16x16xf32, #tpu.memory_space<vmem>>, vector<1x1x16x16xf32>,
    %cst_48 = arith.constant dense<0.000000e+00> : vector<16x16xf32>
    %77 = tpu.matmul %73, %55, %cst_48 {dimension_numbers = #tpu.dot_dimension_numbers<[1], [0], [0], [1], [0, 0, 1, 1], [], []>} : vector<16x16xf32>, vector<16x16xf32>, vector<16x16xf32> -> vector<16x16xf32>
    %c16 = arith.constant 16 : index
    %c0_49 = arith.constant 0 : index
    %78 = vector.load %arg10[%c16, %c0_49] : memref<32x32xf32, #tpu.memory_space<vmem>>, vector<16x32xf32>
    %cst_50 = arith.constant dense<0.000000e+00> : vector<16x32xf32>
    %79 = tpu.matmul %77, %78, %cst_50 {dimension_numbers = #tpu.dot_dimension_numbers<[1], [0], [0], [1], [0, 0, 1, 1], [], []>} : vector<16x16xf32>, vector<16x32xf32>, vector<16x32xf32> -> vector<16x32xf32>
    %80 = arith.addf %52, %79 : vector<16x32xf32>
    %81 = arith.addf %80, %1 : vector<16x32xf32>
    %cst_51 = arith.constant dense<0.000000e+00> : vector<16xf32>
    %82 = vector.multi_reduction <add>, %81, %cst_51 [1] : vector<16x32xf32> to vector<16xf32>
    %83 = vector.shape_cast %82 : vector<16xf32> to vector<16x1xf32>
    %cst_52 = arith.constant 3.200000e+01 : f32
    %84 = vector.broadcast %cst_52 : f32 to vector<16x1xf32>
    %85 = arith.divf %83, %84 : vector<16x1xf32>
    %86 = vector.broadcast %85 : vector<16x1xf32> to vector<16x32xf32>
    %87 = arith.subf %81, %86 : vector<16x32xf32>
    %88 = arith.mulf %87, %87 : vector<16x32xf32>
    %cst_53 = arith.constant dense<0.000000e+00> : vector<16xf32>
    %89 = vector.multi_reduction <add>, %88, %cst_53 [1] : vector<16x32xf32> to vector<16xf32>
    %90 = vector.shape_cast %89 : vector<16xf32> to vector<16x1xf32>
    %cst_54 = arith.constant 3.200000e+01 : f32
    %91 = vector.broadcast %cst_54 : f32 to vector<16x1xf32>
    %92 = arith.divf %90, %91 : vector<16x1xf32>
    %93 = vector.broadcast %85 : vector<16x1xf32> to vector<16x32xf32>
    %94 = arith.subf %81, %93 : vector<16x32xf32>
    %cst_55 = arith.constant 9.99999974E-6 : f32
    %95 = vector.broadcast %cst_55 : f32 to vector<16x1xf32>
    %96 = arith.addf %92, %95 : vector<16x1xf32>
    %97 = math.rsqrt %96 : vector<16x1xf32>
    %98 = vector.broadcast %97 : vector<16x1xf32> to vector<16x32xf32>
    %99 = arith.mulf %94, %98 : vector<16x32xf32>
    %c0_56 = arith.constant 0 : index
    %c0_57 = arith.constant 0 : index
    %100 = vector.load %arg12[%c0_56, %c0_57] : memref<1x32xf32, #tpu.memory_space<vmem>>, vector<1x32xf32>
    %101 = vector.broadcast %100 : vector<1x32xf32> to vector<16x32xf32>
    %102 = arith.mulf %99, %101 : vector<16x32xf32>
    %c0_58 = arith.constant 0 : index
    %c0_59 = arith.constant 0 : index
    %103 = vector.load %arg13[%c0_58, %c0_59] : memref<1x32xf32, #tpu.memory_space<vmem>>, vector<1x32xf32>
    %104 = vector.broadcast %103 : vector<1x32xf32> to vector<16x32xf32>
    %105 = arith.addf %102, %104 : vector<16x32xf32>
    %c0_60 = arith.constant 0 : index
    %c0_61 = arith.constant 0 : index
    %c0_62 = arith.constant 0 : index
    %106 = vector.load %arg14[%c0_60, %c0_61, %c0_62] : memref<1x16x32xf32, #tpu.memory_space<vmem>>, vector<1x16x32xf32>
    %107 = vector.shape_cast %106 : vector<1x16x32xf32> to vector<16x32xf32>
    %108 = vector.shape_cast %105 : vector<16x32xf32> to vector<1x16x32xf32>
    tpu.vector_store %arg14[%c0_60, %c0_61, %c0_62], %108 {strides = array<i32>} : memref<1x16x32xf32, #tpu.memory_space<vmem>>, vector<1x16x32xf32>,
    return
  }
  func.func @transform_0(%arg0: i32) -> (i32, i32, i32) {
    %c0_i32 = arith.constant 0 : i32
    %c0_i32_0 = arith.constant 0 : i32
    %c0_i32_1 = arith.constant 0 : i32
    return %arg0, %c0_i32, %c0_i32_0 : i32, i32, i32
  }
  func.func @transform_1(%arg0: i32) -> (i32, i32, i32) {
    %c0_i32 = arith.constant 0 : i32
    %c0_i32_0 = arith.constant 0 : i32
    %c0_i32_1 = arith.constant 0 : i32
    return %arg0, %c0_i32, %c0_i32_0 : i32, i32, i32
  }
  func.func @transform_2(%arg0: i32) -> (i32, i32, i32) {
    %c0_i32 = arith.constant 0 : i32
    %c0_i32_0 = arith.constant 0 : i32
    %c0_i32_1 = arith.constant 0 : i32
    return %arg0, %c0_i32, %c0_i32_0 : i32, i32, i32
  }
  func.func @transform_3(%arg0: i32) -> (i32, i32) {
    %c0_i32 = arith.constant 0 : i32
    %c0_i32_0 = arith.constant 0 : i32
    %c0_i32_1 = arith.constant 0 : i32
    return %c0_i32, %c0_i32_0 : i32, i32
  }
  func.func @transform_4(%arg0: i32) -> (i32, i32) {
    %c0_i32 = arith.constant 0 : i32
    %c0_i32_0 = arith.constant 0 : i32
    %c0_i32_1 = arith.constant 0 : i32
    return %c0_i32, %c0_i32_0 : i32, i32
  }
  func.func @transform_5(%arg0: i32) -> (i32, i32) {
    %c0_i32 = arith.constant 0 : i32
    %c0_i32_0 = arith.constant 0 : i32
    %c0_i32_1 = arith.constant 0 : i32
    return %c0_i32, %c0_i32_0 : i32, i32
  }
  func.func @transform_6(%arg0: i32) -> (i32, i32) {
    %c0_i32 = arith.constant 0 : i32
    %c0_i32_0 = arith.constant 0 : i32
    %c0_i32_1 = arith.constant 0 : i32
    return %c0_i32, %c0_i32_0 : i32, i32
  }
  func.func @transform_7(%arg0: i32) -> (i32, i32) {
    %c0_i32 = arith.constant 0 : i32
    %c0_i32_0 = arith.constant 0 : i32
    %c0_i32_1 = arith.constant 0 : i32
    return %c0_i32, %c0_i32_0 : i32, i32
  }
  func.func @transform_8(%arg0: i32) -> (i32, i32) {
    %c0_i32 = arith.constant 0 : i32
    %c0_i32_0 = arith.constant 0 : i32
    %c0_i32_1 = arith.constant 0 : i32
    return %c0_i32, %c0_i32_0 : i32, i32
  }
  func.func @transform_9(%arg0: i32) -> (i32, i32) {
    %c0_i32 = arith.constant 0 : i32
    %c0_i32_0 = arith.constant 0 : i32
    %c0_i32_1 = arith.constant 0 : i32
    return %c0_i32, %c0_i32_0 : i32, i32
  }
  func.func @transform_10(%arg0: i32) -> (i32, i32) {
    %c0_i32 = arith.constant 0 : i32
    %c0_i32_0 = arith.constant 0 : i32
    %c0_i32_1 = arith.constant 0 : i32
    return %c0_i32, %c0_i32_0 : i32, i32
  }
  func.func @transform_11(%arg0: i32) -> (i32, i32) {
    %c0_i32 = arith.constant 0 : i32
    %c0_i32_0 = arith.constant 0 : i32
    %c0_i32_1 = arith.constant 0 : i32
    return %c0_i32, %c0_i32_0 : i32, i32
  }
  func.func @transform_12(%arg0: i32) -> (i32, i32) {
    %c0_i32 = arith.constant 0 : i32
    %c0_i32_0 = arith.constant 0 : i32
    %c0_i32_1 = arith.constant 0 : i32
    return %c0_i32, %c0_i32_0 : i32, i32
  }
  func.func @transform_13(%arg0: i32) -> (i32, i32, i32) {
    %c0_i32 = arith.constant 0 : i32
    %c0_i32_0 = arith.constant 0 : i32
    %c0_i32_1 = arith.constant 0 : i32
    return %arg0, %c0_i32, %c0_i32_0 : i32, i32, i32
  }
  func.func @transform_14(%arg0: i32) -> (i32, i32, i32, i32) {
    %c0_i32 = arith.constant 0 : i32
    %c0_i32_0 = arith.constant 0 : i32
    %c0_i32_1 = arith.constant 0 : i32
    %c0_i32_2 = arith.constant 0 : i32
    return %arg0, %c0_i32, %c0_i32_0, %c0_i32_1 : i32, i32, i32, i32
  }
}

</mosaic_0001>

<bundles_post_ra>
// kernel: multi_head_attention.1
= control target key start
LH: loop header
LB: loop body
LE: loop exit
PB: predicated region body
PF: predicated region fallthrough
CT: control target
= control target key end

     0   :  { %s1781_s0 = inlined_call_operand.vmem [shape: f32[2,16,32], index: 0, kind: input, shape index: {}]   ;;  %s1782_s1 = inlined_call_operand.vmem [shape: f32[2,16,32], index: 1, kind: input, shape index: {}]   ;;  %s1783_s2 = inlined_call_operand.vmem [shape: f32[2,16,32], index: 2, kind: input, shape index: {}]   ;;  %s1784_s3 = inlined_call_operand.vmem [shape: f32[32,32], index: 3, kind: input, shape index: {}]   ;;  %s1785_s4 = inlined_call_operand.vmem [shape: f32[1,32], index: 4, kind: input, shape index: {}]   ;;  %s1786_s5 = inlined_call_operand.vmem [shape: f32[32,32], index: 5, kind: input, shape index: {}]   ;;  %s1787_s6 = inlined_call_operand.vmem [shape: f32[1,32], index: 6, kind: input, shape index: {}]   ;;  %s1788_s7 = inlined_call_operand.vmem [shape: f32[32,32], index: 7, kind: input, shape index: {}]   ;;  %s1789_s8 = inlined_call_operand.vmem [shape: f32[1,32], index: 8, kind: input, shape index: {}]   ;;  %s1790_s9 = inlined_call_operand.vmem [shape: f32[32,32], index: 9, kind: input, shape index: {}]   ;;  %s1791_s10 = inlined_call_operand.vmem [shape: f32[1,32], index: 10, kind: input, shape index: {}]   ;;  %s1792_s11 = inlined_call_operand.vmem [shape: f32[1,32], index: 11, kind: input, shape index: {}]   ;;  %s1793_s12 = inlined_call_operand.vmem [shape: f32[1,32], index: 12, kind: input, shape index: {}]   ;;  %s1794_s13 = inlined_call_operand.hbm [shape: f32[2,16,32], index: 13, kind: output, shape index: {0}]   ;;  %s1795_s14 = inlined_call_operand.vmem [shape: f32[2,2,16,16], index: 14, kind: output, shape index: {1}]  }
   0x1   :  { %1797 = sst [smem:[#allocation7_spill]] %s1781_s0 }
   0x2   :  { %1798 = sst [smem:[#allocation8_spill]] %s1782_s1 }
   0x3   :  { %1799 = sst [smem:[#allocation9_spill]] %s1784_s3 }
   0x4   :  { %20 = vsyncpa [#allocation3], 0 }
   0x5   :  { %22 = vsyncpa [#allocation3 + $0x1], 0  ;;  %s1510_s29 = smov 0   ;;  %s1512_s30 = smov 0  }
   0x6   :  { %s1514_s15 = smov 0   ;;  %s1516_s16 = smov 0  }
   0x7 LB: > { %1800 = sst [smem:[#allocation5_spill]] %s1425_s15  ;;  %s1531_s17 = sadd.s32 4294967295, %s1429_s16   ;;  %s1429_s16 = sphi %s1516_s16, %s1811_s16   ;;  %s1425_s15 = sphi %s1514_s15, %s1808_s15   ;;  %s1421_s30 = sphi %s1512_s30, %s1810_s30   ;;  %s1417_s29 = sphi %s1510_s29, %s1809_s29  }
   0x8   : > { %s1232_s18 = sadd.s32 4294967294, %s1429_s16   ;;  %s1535_s19 = sadd.s32 1, %s1429_s16  }
   0x9   : > { %s323_s20 = sadd.s32 1, %s1425_s15  ;;  %s320_s21 = ssub.s32 %s1429_s16, %s1535_s19 }
   0xa   : > { %p333_p0 = scmp.ne.s32.totalorder %s1425_s15, %s1421_s30  ;;  %p321_p1 = scmp.eq.s32.totalorder %s320_s21, 0 }
   0xb   : > { %p334_p2 = scmp.eq.s32.totalorder %s1531_s17, 1  ;;  %p339_p3 = scmp.ne.s32.totalorder %s1421_s30, %s1417_s29 }
   0xc   : > { %p340_p4 = scmp.eq.s32.totalorder %s1232_s18, 1  ;;  %p1235_p7 = scmp.ge.s32.totalorder %s1429_s16, 1 }
   0xd   : > { %s1546_s22 = scalar_select %p321_p1, %s1425_s15, %s323_s20  }
   0xe   : > { %p1548_p5 = por %p334_p2, %p333_p0  ;;  %p1552_p6 = por %p340_p4, %p339_p3 }
   0xf   : > { %1801 = sst [smem:[#allocation6_spill]] %s1546_s22  ;;  %p438_p8 = scmp.lt.s32.totalorder %s1429_s16, 3 }
  0x11   : > { %p439_p9 = pnand %p1235_p7, %p438_p8 }
  0x12   : > { %s1804_s3 = sld [smem:[#allocation9_spill]] (!%p439_p9)  ;;  %p499_p10 = scmp.lt.s32.totalorder (!%p439_p9), %s1531_s17, 1 }
  0x13   : > { %442 = sbr.rel (%p439_p9) target bundleno = 1400 (0x578), region = 72  ;;  %s1805_s0 = sld [smem:[#allocation7_spill]] (!%p439_p9) }
  0x14   : > { %s1806_s1 = sld [smem:[#allocation8_spill]] (!%p439_p9) }
  0x18   : > { %v528_v0 = vld [vmem:[%s1804_s3 + $0x18] sm:$0xff]  ;;  %v527_v1 = vld [vmem:[%s1804_s3 + $0x10] sm:$0xff]  ;;  %v526_v2 = vld [vmem:[%s1804_s3 + $0x8] sm:$0xff]  ;;  %s1569_s21 = scalar_select %p499_p10, %s1531_s17, 1  ;;  %vm533_vm0 = vcmask 261120   ;;  %vm642_vm1 = vcmask 130048  }
  0x19   : > { %552 = vmatpush.msra.mxu0 %v528_v0  ;;  %1279 = vmatpush.msra.mxu1 %v528_v0  ;;  %v525_v3 = vld [vmem:[%s1804_s3] sm:$0xff]  ;;  %v566_v6 = vld [vmem:[%s1786_s5 + $0x18] sm:$0xff]  ;;  %v565_v7 = vld [vmem:[%s1786_s5 + $0x10] sm:$0xff] }
  0x1a   : > { %s1575_s22 = sshll.u32 %s1569_s21, 4  ;;  %v564_v8 = vld [vmem:[%s1786_s5 + $0x8] sm:$0xff]  ;;  %v563_v9 = vld [vmem:[%s1786_s5] sm:$0xff]  ;;  %v603_v16 = vld [vmem:[%s1788_s7 + $0x18] sm:$0xff] }
  0x1b   : > { %553 = vmatpush.msra.mxu0 %v527_v1  ;;  %1280 = vmatpush.msra.mxu1 %v527_v1  ;;  %s503_s18 = scalar_lea.vmem %s1805_s0, %s1575_s22  ;;  %s508_s20 = scalar_lea.vmem %s1806_s1, %s1575_s22  ;;  %v1331_v12 = vld [vmem:[%s1785_s4] ss:$0 sm:$0xff]  ;;  %v602_v23 = vld [vmem:[%s1788_s7 + $0x10] sm:$0xff]  ;;  %v601_v24 = vld [vmem:[%s1788_s7 + $0x8] sm:$0xff] }
  0x1c   : > { %v1581_v4 = vld [vmem:[%s503_s18] sm:$0xff]  ;;  %v1583_v5 = vld [vmem:[%s503_s18 + $0x8] sm:$0xff]  ;;  %s1431_s0 = smov 112   ;;  %626 = vmatpush.msra.mxu2 %v603_v16  ;;  %s513_s27 = scalar_lea.vmem %s1783_s2, %s1575_s22 }
  0x1d   : > { %554 = vmatpush.msra.mxu0 %v526_v2  ;;  %1281 = vmatpush.msra.mxu1 %v526_v2  ;;  %v521_v10 = vld [vmem:[%s508_s20] sm:$0xff]  ;;  %v522_v11 = vld [vmem:[%s508_s20 + $0x8] sm:$0xff]  ;;  %s1278_s18 = sshll.u32 %s1531_s17, 4 }
  0x1e   : > { %v1332_v19 = vld [vmem:[%s1787_s6] ss:$0 sm:$0xff]  ;;  %627 = vmatpush.msra.mxu2 %v602_v23  ;;  %v524_v27 = vld [vmem:[%s513_s27 + $0x8] sm:$0xff]  ;;  %s1114_s15 = scalar_lea.hbm %s1794_s13, %s1278_s18  ;;  %s1387_s18 = scalar_lea.hbm %s1794_s13, 32 }
  0x1f   : > { %555 = vmatpush.msra.mxu0 %v525_v3  ;;  %1282 = vmatpush.msra.mxu1 %v525_v3  ;;  %v600_v25 = vld [vmem:[%s1788_s7] sm:$0xff]  ;;  %s1117_s25 = sshll.u32 %s1114_s15, 4  ;;  %s1118_s25 = int_to_ptr.hbm [resolvable:$true] %s1117_s25 }
  0x20   : > { %1245 = vmatmul.msk.f32.vlgmr.msra.gmra.mxu0 %vm533_vm0, %v1581_v4  ;;  %1246 = vmatmul.msk.f32.vlgmr.msra.gmra.mxu1 %vm533_vm0, %v1583_v5  ;;  %v523_v26 = vld [vmem:[%s513_s27] sm:$0xff]  ;;  %s1381_s26 = sshra.s32 %s1118_s25, 4  ;;  %s1382_s26 = int_to_ptr.hbm [resolvable:$true] %s1381_s26 }
  0x21   : > { %589 = vmatpush.msrb.mxu1 %v566_v6  ;;  %628 = vmatpush.msra.mxu2 %v601_v24  ;;  %v1333_v37 = vld [vmem:[%s1789_s8] ss:$0 sm:$0xff]  ;;  %p1388_p0 = scmp.lt.s32.totalorder %s1382_s26, %s1794_s13 }
  0x23   : > { %590 = vmatpush.msrb.mxu1 %v565_v7  ;;  %629 = vmatpush.msra.mxu2 %v600_v25 }
  0x24   : > { %1249 = vmatmul.msk.f32.vlgmr.msra.gmra.mxu2 %vm533_vm0, %v523_v26 }
  0x25   : > { %591 = vmatpush.msrb.mxu1 %v564_v8 }
  0x27   : > { %592 = vmatpush.msrb.mxu1 %v563_v9 }
  0x28   : > { %1247 = vmatmul.msk.f32.vlgmr.msrb.gmra.mxu1 %vm533_vm0, %v521_v10 }
  0x2c   : > { %1250 = vmatmul.msk.f32.gmra.mxu2 %vm533_vm0, %v524_v27 }
  0x30   : > { %1248 = vmatmul.msk.f32.gmra.mxu1 %vm533_vm0, %v522_v11 }
  0x9d   : > { %v557_v13 = vpop.f32.mrf.mxu0  ;;  %v560_v14 = vpop.f32.mrf.mxu1 }
  0x9e   : > { %v558_v15 = vadd.f32 %v1331_v12, %v557_v13  ;;  %v561_v18 = vadd.f32 %v1331_v12, %v560_v14 }
  0xa0   : > { %830 = vrot.lane.b32.xlu1 %v558_v15, %s1431_s0 }
  0xa5   : > { %v594_v17 = vpop.f32.mrf.mxu1 }
  0xa6   : > { %v595_v22 = vadd.f32 %v1332_v19, %v594_v17 }
  0xa7   : > { %v631_v36 = vpop.f32.mrf.mxu2 }
  0xa8   : > { %832 = vrot.lane.b32.xlu1 %v561_v18, %s1431_s0  ;;  %v1647_v38 = vadd.f32 %v1333_v37, %v631_v36 }
  0xad   : > { %v597_v20 = vpop.f32.mrf.mxu1 }
  0xae   : > { %v598_v21 = vadd.f32 %v1332_v19, %v597_v20 }
  0xaf   : > { %v634_v39 = vpop.f32.mrf.mxu2 }
  0xb0   : > { %836 = vrot.lane.b32.xlu0 %v598_v21, %s1431_s0  ;;  %1251 = vmatpush.xpose.msk.msra.mxu3 %vm642_vm1, %v598_v21  ;;  %v1649_v40 = vadd.f32 %v1333_v37, %v634_v39 }
  0xb2   : > { %v1326_v41 = vpack.i.bf16 %v1647_v38, %v1649_v40  ;;  %788 = vmatpush.msrb.mxu0 %v1649_v40 }
  0xb4   : > { %1252 = vmatpush.xpose.msk.msra.mxu3 %vm642_vm1, %v595_v22  ;;  %789 = vmatpush.msrb.mxu0 %v1647_v38 }
  0xb7   : > { %1253 = vmatmul.msk.f32.vlgmr.msra.gmra.mxu3 %vm642_vm1, %v558_v15 }
  0xb8   : > { %834 = vrot.lane.b32.xlu0 %v595_v22, %s1431_s0 }
  0xbf   : > { %1254 = vmatmul.msk.f32.gmra.mxu3 %vm642_vm1, %v561_v18 }
 0x112   : > { %v831_v30 = vpop.permute.xlu1 %830 }
 0x11a   : > { %v833_v31 = vpop.permute.xlu1 %832 }
 0x122   : > { %v837_v28 = vpop.permute.xlu0 %836 }
 0x123   : > { %1259 = vmatpush.xpose.msk.msrb.mxu2 %vm642_vm1, %v837_v28 }
 0x12a   : > { %v835_v29 = vpop.permute.xlu0 %834 }
 0x12b   : > { %1260 = vmatpush.xpose.msk.msrb.mxu2 %vm642_vm1, %v835_v29 }
 0x12e   : > { %1261 = vmatmul.msk.f32.vlgmr.msrb.gmra.mxu2 %vm642_vm1, %v831_v30 }
 0x136   : > { %1262 = vmatmul.msk.f32.gmra.mxu2 %vm642_vm1, %v833_v31 }
 0x13a   : > { %v672_v32 = vpop.f32.mrf.mxu3 }
 0x13b   : > { %v678_v45 = vmul.f32 0.25, %v672_v32 }
 0x13d   : > { %v680_v49 = vsel %vm642_vm1, %v678_v45, -inf }
 0x142   : > { %v675_v33 = vpop.f32.mrf.mxu3 }
 0x143   : > { %v679_v34 = vmul.f32 0.25, %v675_v33 }
 0x145   : > { %v683_v35 = vsel %vm642_vm1, %v679_v34, -inf }
 0x146   : > { %684 = vmax.xlane.f32.xlu1 %v683_v35 }
 0x1b1   : > { %v863_v42 = vpop.f32.mrf.mxu2 }
 0x1b2   : > { %v869_v43 = vmul.f32 0.25, %v863_v42 }
 0x1b4   : > { %v871_v44 = vsel %vm642_vm1, %v869_v43, -inf }
 0x1b5   : > { %872 = vmax.xlane.f32.xlu2 %v871_v44 }
 0x1b9   : > { %v866_v46 = vpop.f32.mrf.mxu2  ;;  %v685_v61 = vpop.xlane.xlu1 %684 }
 0x1ba   : > { %v870_v47 = vmul.f32 0.25, %v866_v46  ;;  %v687_v63 = vsub.f32 %v679_v34, %v685_v61 }
 0x1bc   : > { %v874_v48 = vsel %vm642_vm1, %v870_v47, -inf  ;;  %v690_v1 = vmul.f32 1.442695, %v687_v63 }
 0x1bd   : > { %875 = vmax.xlane.f32.xlu0 %v874_v48  ;;  %681 = vmax.xlane.f32.xlu2 %v680_v49 }
 0x228   : > { %v873_v50 = vpop.xlane.xlu2 %872 }
 0x229   : > { %v877_v54 = vsub.f32 %v869_v43, %v873_v50 }
 0x22b   : > { %v879_v55 = vmul.f32 1.442695, %v877_v54 }
 0x230   : > { %v682_v51 = vpop.xlane.xlu2 %681  ;;  %v876_v56 = vpop.xlane.xlu0 %875 }
 0x231   : > { %v686_v52 = vsub.f32 %v678_v45, %v682_v51  ;;  %v878_v58 = vsub.f32 %v870_v47, %v876_v56 }
 0x233   : > { %v688_v53 = vmul.f32 1.442695, %v686_v52  ;;  %v881_v60 = vmul.f32 1.442695, %v878_v58 }
 0x235   : > { %1337 = vpow2.f32 %v688_v53 }
 0x236   : > { %1339 = vpow2.f32 %v879_v55 }
 0x237   : > { %1341 = vpow2.f32 %v881_v60 }
 0x238   : > { %1343 = vpow2.f32 %v690_v1 }
 0x23b   : > { %v1338_v57 = vpop.eup %1337 }
 0x23c   : > { %v692_v59 = vsel %vm642_vm1, %v1338_v57, 0.0  ;;  %v1340_v62 = vpop.eup %1339 }
 0x23d   : > { %693 = vadd.xlane.f32.xlu2 %v692_v59  ;;  %v883_v0 = vsel %vm642_vm1, %v1340_v62, 0.0  ;;  %v1660_v2 = vpop.eup %1341 }
 0x23e   : > { %v886_v3 = vsel %vm642_vm1, %v1660_v2, 0.0  ;;  %v1664_v6 = vpop.eup %1343 }
 0x23f   : > { %v695_v7 = vsel %vm642_vm1, %v1664_v6, 0.0 }
 0x245   : > { %884 = vadd.xlane.f32.xlu2 %v883_v0 }
 0x24d   : > { %887 = vadd.xlane.f32.xlu2 %v886_v3 }
 0x255   : > { %696 = vadd.xlane.f32.xlu2 %v695_v7 }
 0x2b0   : > { %v694_v8 = vpop.xlane.xlu2 %693 }
 0x2b1   : > { %1345 = vrcp.f32 %v694_v8  ;;  %v709_v13 = vand.u32 2147483648, %v694_v8  ;;  %v707_v15 = vand.u32 2147483647, %v694_v8  ;;  %vm703_vm3 = vweird.f32 %v694_v8 }
 0x2b3   : > { %v710_v18 = vor.u32 1.1754944e-38, %v709_v13  ;;  %vm708_vm5 = vcmp.eq.f32.partialorder %v707_v15, 8.507059e+37 }
 0x2b7   : > { %v1346_v9 = vpop.eup %1345 }
 0x2b8   : > { %v699_v10 = vmul.f32 %v1346_v9, %v694_v8  ;;  %v885_v11 = vpop.xlane.xlu2 %884  ;;  %vm704_vm2 = vweird.f32 %v1346_v9 }
 0x2b9   : > { %1347 = vrcp.f32 %v885_v11  ;;  %vm705_vm4 = vmor %vm703_vm3, %vm704_vm2  ;;  %v900_v25 = vand.u32 2147483648, %v885_v11  ;;  %v898_v28 = vand.u32 2147483647, %v885_v11  ;;  %vm894_vm7 = vweird.f32 %v885_v11 }
 0x2ba   : > { %v700_v12 = vsub.f32 1.0, %v699_v10 }
 0x2bb   : > { %v901_v31 = vor.u32 1.1754944e-38, %v900_v25  ;;  %vm899_vm9 = vcmp.eq.f32.partialorder %v898_v28, 8.507059e+37 }
 0x2bc   : > { %v701_v14 = vmul.f32 %v1346_v9, %v700_v12 }
 0x2be   : > { %v702_v16 = vadd.f32 %v1346_v9, %v701_v14 }
 0x2bf   : > { %v1348_v17 = vpop.eup %1347 }
 0x2c0   : > { %v890_v19 = vmul.f32 %v1348_v17, %v885_v11  ;;  %v888_v20 = vpop.xlane.xlu2 %887  ;;  %v706_v21 = vsel %vm705_vm4, %v1346_v9, %v702_v16  ;;  %vm895_vm6 = vweird.f32 %v1348_v17  ;;  %v798_v11 = vld [vmem:[%s1790_s9 + $0x8] sm:$0xff] }
 0x2c1   : > { %1349 = vrcp.f32 %v888_v20  ;;  %v711_v22 = vsel %vm708_vm5, %v710_v18, %v706_v21  ;;  %vm896_vm8 = vmor %vm894_vm7, %vm895_vm6  ;;  %v915_v39 = vand.u32 2147483648, %v888_v20  ;;  %v913_v44 = vand.u32 2147483647, %v888_v20  ;;  %819 = vmatpush.msra.mxu1 %v798_v11 }
 0x2c2   : > { %v891_v23 = vsub.f32 1.0, %v890_v19  ;;  %v1668_v24 = vmul.f32 %v1338_v57, %v711_v22  ;;  %vm909_vm11 = vweird.f32 %v888_v20 }
 0x2c3   : > { %v916_v47 = vor.u32 1.1754944e-38, %v915_v39  ;;  %vm914_vm13 = vcmp.eq.f32.partialorder %v913_v44, 8.507059e+37 }
 0x2c4   : > { %v892_v26 = vmul.f32 %v1348_v17, %v891_v23  ;;  %v728_v27 = vsel %vm642_vm1, %v1668_v24, 0.0 }
 0x2c5   : > { %729 = vadd.xlane.f32.xlu2 %v728_v27 }
 0x2c6   : > { %v893_v29 = vadd.f32 %v1348_v17, %v892_v26 }
 0x2c7   : > { %v1350_v30 = vpop.eup %1349 }
 0x2c8   : > { %v905_v32 = vmul.f32 %v1350_v30, %v888_v20  ;;  %v697_v33 = vpop.xlane.xlu2 %696  ;;  %v897_v34 = vsel %vm896_vm8, %v1348_v17, %v893_v29  ;;  %vm910_vm10 = vweird.f32 %v1350_v30 }
 0x2c9   : > { %1351 = vrcp.f32 %v697_v33  ;;  %v902_v35 = vsel %vm899_vm9, %v901_v31, %v897_v34  ;;  %vm911_vm12 = vmor %vm909_vm11, %vm910_vm10  ;;  %v724_v53 = vand.u32 2147483648, %v697_v33  ;;  %v722_v56 = vand.u32 2147483647, %v697_v33 }
 0x2ca   : > { %v906_v36 = vsub.f32 1.0, %v905_v32  ;;  %v1672_v37 = vmul.f32 %v1340_v62, %v902_v35  ;;  %vm718_vm15 = vweird.f32 %v697_v33 }
 0x2cb   : > { %v725_v58 = vor.u32 1.1754944e-38, %v724_v53  ;;  %vm723_vm3 = vcmp.eq.f32.partialorder %v722_v56, 8.507059e+37 }
 0x2cc   : > { %v907_v42 = vmul.f32 %v1350_v30, %v906_v36  ;;  %v919_v43 = vsel %vm642_vm1, %v1672_v37, 0.0 }
 0x2cd   : > { %920 = vadd.xlane.f32.xlu2 %v919_v43 }
 0x2ce   : > { %v908_v45 = vadd.f32 %v1350_v30, %v907_v42 }
 0x2cf   : > { %v1352_v46 = vpop.eup %1351 }
 0x2d0   : > { %v714_v48 = vmul.f32 %v1352_v46, %v697_v33  ;;  %v912_v49 = vsel %vm911_vm12, %v1350_v30, %v908_v45  ;;  %vm719_vm14 = vweird.f32 %v1352_v46 }
 0x2d1   : > { %v917_v50 = vsel %vm914_vm13, %v916_v47, %v912_v49  ;;  %vm720_vm2 = vmor %vm718_vm15, %vm719_vm14 }
 0x2d2   : > { %v715_v51 = vsub.f32 1.0, %v714_v48  ;;  %v1677_v52 = vmul.f32 %v1660_v2, %v917_v50 }
 0x2d4   : > { %v716_v54 = vmul.f32 %v1352_v46, %v715_v51  ;;  %v922_v55 = vsel %vm642_vm1, %v1677_v52, 0.0 }
 0x2d5   : > { %923 = vadd.xlane.f32.xlu0 %v922_v55 }
 0x2d6   : > { %v717_v57 = vadd.f32 %v1352_v46, %v716_v54 }
 0x2d8   : > { %v721_v59 = vsel %vm720_vm2, %v1352_v46, %v717_v57 }
 0x2d9   : > { %v726_v60 = vsel %vm723_vm3, %v725_v58, %v721_v59  ;;  %v998_v58 = vld [vmem:[%s1790_s9 + $0x18] sm:$0xff]  ;;  %v997_v59 = vld [vmem:[%s1790_s9 + $0x10] sm:$0xff] }
 0x2da   : > { %v1682_v61 = vmul.f32 %v1664_v6, %v726_v60  ;;  %1019 = vmatpush.msra.mxu0 %v998_v58 }
 0x2dc   : > { %v731_v62 = vsel %vm642_vm1, %v1682_v61, 0.0  ;;  %1020 = vmatpush.msra.mxu0 %v997_v59 }
 0x2dd   : > { %732 = vadd.xlane.f32.xlu1 %v731_v62 }
 0x2e5   : > { %1327 = vrot.lane.b32.xlu2 %v1326_v41, %s1431_s0  ;;  %s1277_s0 = sshll.u32 %s1569_s21, 5 }
 0x2e6   : > { %s1697_s27 = scalar_lea.vmem %s1795_s14, %s1277_s0  ;;  %s489_s0 = sand.u32 1, %s1421_s30  }
 0x2e7   : > { %s1236_s28 = sshll.u32 %s489_s0, 4  ;;  %s1098_s17 = scalar_lea.sflag [#allocation3], %s489_s0 }
 0x2e8   : > { %s491_s3 = scalar_lea.vmem [#allocation2], %s1236_s28 }
 0x2e9   : > { %s1115_s20 = sshll.u32 %s491_s3, 4  ;;  %s1116_s20 = int_to_ptr.vmem [resolvable:$true] %s1115_s20 }
 0x338   : > { %v730_v63 = vpop.xlane.xlu2 %729 }
 0x339   : > { %v734_v0 = vadd.f32 1e-08, %v730_v63 }
 0x33b   : > { %1353 = vrcp.f32 %v734_v0  ;;  %v747_v8 = vand.u32 2147483648, %v734_v0  ;;  %v745_v10 = vand.u32 2147483647, %v734_v0  ;;  %vm741_vm5 = vweird.f32 %v734_v0 }
 0x33d   : > { %v748_v15 = vor.u32 1.1754944e-38, %v747_v8  ;;  %vm746_vm7 = vcmp.eq.f32.partialorder %v745_v10, 8.507059e+37 }
 0x340   : > { %v921_v1 = vpop.xlane.xlu2 %920 }
 0x341   : > { %v1354_v2 = vpop.eup %1353  ;;  %v925_v3 = vadd.f32 1e-08, %v921_v1 }
 0x342   : > { %v737_v7 = vmul.f32 %v1354_v2, %v734_v0  ;;  %vm742_vm4 = vweird.f32 %v1354_v2  ;;  %v1334_v0 = vld [vmem:[%s1791_s10] ss:$0 sm:$0xff] }
 0x343   : > { %1355 = vrcp.f32 %v925_v3  ;;  %vm743_vm6 = vmor %vm741_vm5, %vm742_vm4  ;;  %v938_v22 = vand.u32 2147483648, %v925_v3  ;;  %v936_v25 = vand.u32 2147483647, %v925_v3  ;;  %vm932_vm9 = vweird.f32 %v925_v3 }
 0x344   : > { %v738_v6 = vsub.f32 1.0, %v737_v7 }
 0x345   : > { %v939_v30 = vor.u32 1.1754944e-38, %v938_v22  ;;  %vm937_vm11 = vcmp.eq.f32.partialorder %v936_v25, 8.507059e+37 }
 0x346   : > { %v739_v9 = vmul.f32 %v1354_v2, %v738_v6 }
 0x348   : > { %v924_v38 = vpop.xlane.xlu0 %923  ;;  %v1328_v40 = vpop.permute.xlu2 %1327  ;;  %v740_v41 = vadd.f32 %v1354_v2, %v739_v9 }
 0x349   : > { %v1356_v12 = vpop.eup %1355  ;;  %v926_v13 = vadd.f32 1e-08, %v924_v38  ;;  %v1329_v14 = vunpack.i.l.bf16 %v1328_v40  ;;  %v1330_v18 = vunpack.i.h.bf16 %v1328_v40 }
 0x34a   : > { %v928_v16 = vmul.f32 %v1356_v12, %v925_v3  ;;  %v744_v17 = vsel %vm743_vm6, %v1354_v2, %v740_v41  ;;  %vm933_vm8 = vweird.f32 %v1356_v12 }
 0x34b   : > { %1357 = vrcp.f32 %v926_v13  ;;  %988 = vmatpush.msrb.mxu3 %v1329_v14  ;;  %v749_v19 = vsel %vm746_vm7, %v748_v15, %v744_v17  ;;  %vm934_vm10 = vmor %vm932_vm9, %vm933_vm8  ;;  %v953_v35 = vand.u32 2147483648, %v926_v13  ;;  %v951_v39 = vand.u32 2147483647, %v926_v13 }
 0x34c   : > { %v929_v20 = vsub.f32 1.0, %v928_v16  ;;  %v750_v21 = vmul.f32 %v749_v19, %v1668_v24  ;;  %vm947_vm13 = vweird.f32 %v926_v13 }
 0x34d   : > { %989 = vmatpush.msrb.mxu3 %v1330_v18  ;;  %v954_v44 = vor.u32 1.1754944e-38, %v953_v35  ;;  %vm952_vm15 = vcmp.eq.f32.partialorder %v951_v39, 8.507059e+37 }
 0x34e   : > { %v930_v23 = vmul.f32 %v1356_v12, %v929_v20  ;;  %766 = vst.msk [vmem:[%s1697_s27] sm:$0xff] %vm642_vm1, %v750_v21  ;;  %1255 = vmatmul.msk.f32.vlgmr.msrb.gmra.mxu0 %vm642_vm1, %v750_v21 }
 0x350   : > { %v733_v26 = vpop.xlane.xlu1 %732  ;;  %v931_v27 = vadd.f32 %v1356_v12, %v930_v23 }
 0x351   : > { %v1358_v28 = vpop.eup %1357  ;;  %v735_v29 = vadd.f32 1e-08, %v733_v26 }
 0x352   : > { %v943_v31 = vmul.f32 %v1358_v28, %v926_v13  ;;  %v935_v32 = vsel %vm934_vm10, %v1356_v12, %v931_v27  ;;  %vm948_vm12 = vweird.f32 %v1358_v28  ;;  %v1432_v12 = vmov 32.0  }
 0x353   : > { %1359 = vrcp.f32 %v735_v29  ;;  %v940_v24 = vsel %vm937_vm11, %v939_v30, %v935_v32  ;;  %vm949_vm14 = vmor %vm947_vm13, %vm948_vm12  ;;  %v762_v49 = vand.u32 2147483648, %v735_v29  ;;  %v760_v51 = vand.u32 2147483647, %v735_v29 }
 0x354   : > { %v944_v33 = vsub.f32 1.0, %v943_v31  ;;  %v941_v34 = vmul.f32 %v940_v24, %v1672_v37  ;;  %vm756_vm3 = vweird.f32 %v735_v29  ;;  %1361 = vrcp.f32 %v1432_v12 }
 0x355   : > { %v763_v54 = vor.u32 1.1754944e-38, %v762_v49  ;;  %vm761_vm5 = vcmp.eq.f32.partialorder %v760_v51, 8.507059e+37 }
 0x356   : > { %1263 = vst.msk [vmem:[%s1697_s27 + $0x10] sm:$0xff] %vm642_vm1, %v941_v34  ;;  %1265 = vmatmul.msk.f32.vlgmr.msrb.gmra.mxu3 %vm642_vm1, %v941_v34  ;;  %v945_v36 = vmul.f32 %v1358_v28, %v944_v33 }
 0x358   : > { %v946_v42 = vadd.f32 %v1358_v28, %v945_v36 }
 0x359   : > { %v1360_v43 = vpop.eup %1359 }
 0x35a   : > { %v752_v45 = vmul.f32 %v1360_v43, %v735_v29  ;;  %v950_v46 = vsel %vm949_vm14, %v1358_v28, %v946_v42  ;;  %vm757_vm2 = vweird.f32 %v1360_v43  ;;  %v1362_v13 = vpop.eup %1361 }
 0x35b   : > { %v955_v47 = vsel %vm952_vm15, %v954_v44, %v950_v46  ;;  %vm758_vm4 = vmor %vm756_vm3, %vm757_vm2  ;;  %v1039_v14 = vmul.f32 32.0, %v1362_v13  ;;  %v1336_v46 = vld [vmem:[%s1793_s12] ss:$0 sm:$0xff] }
 0x35c   : > { %v753_v48 = vsub.f32 1.0, %v752_v45  ;;  %v956_v37 = vmul.f32 %v955_v47, %v1677_v52  ;;  %v797_v52 = vld [vmem:[%s1790_s9] sm:$0xff] }
 0x35d   : > { %820 = vmatpush.msra.mxu1 %v797_v52  ;;  %v1040_v15 = vsub.f32 1.0, %v1039_v14 }
 0x35e   : > { %1264 = vst.msk [vmem:[%s1697_s27 + $0x18] sm:$0xff] %vm642_vm1, %v956_v37  ;;  %1266 = vmatmul.msk.f32.gmra.mxu3 %vm642_vm1, %v956_v37  ;;  %v754_v50 = vmul.f32 %v1360_v43, %v753_v48 }
 0x35f   : > { %v1041_v16 = vmul.f32 %v1362_v13, %v1040_v15 }
 0x360   : > { %v755_v53 = vadd.f32 %v1360_v43, %v754_v50 }
 0x361   : > { %v1042_v17 = vadd.f32 %v1362_v13, %v1041_v16 }
 0x362   : > { %v759_v55 = vsel %vm758_vm4, %v1360_v43, %v755_v53  ;;  %v1335_v43 = vld [vmem:[%s1792_s11] ss:$0 sm:$0xff] }
 0x363   : > { %v764_v56 = vsel %vm761_vm5, %v763_v54, %v759_v55 }
 0x364   : > { %v765_v57 = vmul.f32 %v764_v56, %v1682_v61 }
 0x366   : > { %767 = vst.msk [vmem:[%s1697_s27 + $0x8] sm:$0xff] %vm642_vm1, %v765_v57  ;;  %1256 = vmatmul.msk.f32.gmra.mxu0 %vm642_vm1, %v765_v57  ;;  %s1383_s27 = scalar_lea.hbm %s1382_s26, 16 }
 0x367   : > { %p1384_p11 = scmp.ne.s32.totalorder %s1382_s26, %s1383_s27  ;;  %p1389_p1 = scmp.lt.s32.totalorder %s1387_s18, %s1383_s27 }
 0x369   : > { %p1385_p12 = pnand %p1384_p11, %p1548_p5  ;;  %p1390_p2 = por %p1389_p1, %p1388_p0 }
 0x36b   : > { %p1386_p13 = pneg %p1385_p12 }
 0x36d   : > { %p1391_p3 = pnand %p1390_p2, %p1386_p13 }
 0x3cb   : > { %v791_v60 = vpop.f32.mrf.mxu0 }
 0x3cc   : > { %1257 = vmatmul.msk.f32.vlgmr.msra.gmra.mxu1 %vm642_vm1, %v791_v60 }
 0x3d9   : > { %v991_v61 = vpop.f32.mrf.mxu3 }
 0x3da   : > { %1267 = vmatmul.msk.f32.vlgmr.msra.gmra.mxu0 %vm642_vm1, %v991_v61 }
 0x3e1   : > { %v994_v62 = vpop.f32.mrf.mxu3 }
 0x3e2   : > { %1268 = vmatmul.msk.f32.gmra.mxu0 %vm642_vm1, %v994_v62 }
 0x3e3   : > { %v794_v63 = vpop.f32.mrf.mxu0 }
 0x3e4   : > { %1258 = vmatmul.msk.f32.gmra.mxu1 %vm642_vm1, %v794_v63  ;;  %vm1043_vm1 = vweird.f32 %v1362_v13 }
 0x449   : > { %v822_v1 = vpop.f32.mrf.mxu1 }
 0x44a   : > { %v828_v2 = vadd.f32 %v1334_v0, %v822_v1 }
 0x457   : > { %v1022_v3 = vpop.f32.mrf.mxu0 }
 0x458   : > { %v1028_v7 = vadd.f32 %v1022_v3, %v828_v2 }
 0x45a   : > { %v1030_v6 = vadd.f32 %v1028_v7, %v1581_v4  ;;  %v1044_v4 = vsel %vm1043_vm1, %v1362_v13, %v1042_v17 }
 0x45c   : > { %v1032_v8 = vsel %vm533_vm0, %v1030_v6, 0.0 }
 0x45d   : > { %1033 = vadd.xlane.f32.xlu0 %v1032_v8 }
 0x45f   : > { %v1025_v11 = vpop.f32.mrf.mxu0 }
 0x461   : > { %v825_v9 = vpop.f32.mrf.mxu1 }
 0x462   : > { %v829_v10 = vadd.f32 %v1334_v0, %v825_v9 }
 0x464   : > { %v1029_v38 = vadd.f32 %v1025_v11, %v829_v10 }
 0x466   : > { %v1031_v40 = vadd.f32 %v1029_v38, %v1583_v5 }
 0x468   : > { %v1035_v41 = vsel %vm533_vm0, %v1031_v40, 0.0 }
 0x469   : > { %1036 = vadd.xlane.f32.xlu1 %v1035_v41 }
 0x4d0   : > { %v1034_v18 = vpop.xlane.xlu0 %1033 }
 0x4d1   : > { %v1045_v19 = vmul.f32 %v1044_v4, %v1034_v18 }
 0x4d3   : > { %v1047_v20 = vsub.f32 %v1030_v6, %v1045_v19 }
 0x4d5   : > { %v1049_v21 = vmul.f32 %v1047_v20, %v1047_v20 }
 0x4d7   : > { %v1051_v22 = vsel %vm533_vm0, %v1049_v21, 0.0 }
 0x4d8   : > { %1052 = vadd.xlane.f32.xlu0 %v1051_v22 }
 0x4dc   : > { %v1037_v5 = vpop.xlane.xlu1 %1036 }
 0x4dd   : > { %v1046_v23 = vmul.f32 %v1044_v4, %v1037_v5 }
 0x4df   : > { %v1048_v25 = vsub.f32 %v1031_v40, %v1046_v23 }
 0x4e1   : > { %v1050_v26 = vmul.f32 %v1048_v25, %v1048_v25 }
 0x4e3   : > { %v1054_v27 = vsel %vm533_vm0, %v1050_v26, 0.0 }
 0x4e4   : > { %1055 = vadd.xlane.f32.xlu1 %v1054_v27 }
 0x54b   : > { %v1053_v28 = vpop.xlane.xlu0 %1052 }
 0x54c   : > { %v1057_v29 = vmul.f32 %v1053_v28, %v1044_v4 }
 0x54e   : > { %v1059_v30 = vadd.f32 1e-05, %v1057_v29 }
 0x550   : > { %1363 = vrsqrt.f32 %v1059_v30  ;;  %vm1067_vm7 = vweird.f32 %v1059_v30 }
 0x556   : > { %v1364_v31 = vpop.eup %1363 }
 0x557   : > { %v1062_v32 = vmul.f32 %v1364_v31, %v1059_v30  ;;  %v1056_v24 = vpop.xlane.xlu1 %1055  ;;  %vm1068_vm6 = vweird.f32 %v1364_v31 }
 0x558   : > { %v1058_v33 = vmul.f32 %v1056_v24, %v1044_v4  ;;  %vm1069_vm8 = vmor %vm1067_vm7, %vm1068_vm6 }
 0x559   : > { %v1063_v34 = vmul.f32 %v1364_v31, %v1062_v32 }
 0x55a   : > { %v1060_v35 = vadd.f32 1e-05, %v1058_v33 }
 0x55b   : > { %v1064_v36 = vmul.f32 0.5, %v1063_v34 }
 0x55c   : > { %1365 = vrsqrt.f32 %v1060_v35  ;;  %vm1077_vm10 = vweird.f32 %v1060_v35 }
 0x55d   : > { %v1065_v39 = vsub.f32 1.5, %v1064_v36 }
 0x55f   : > { %v1066_v42 = vmul.f32 %v1364_v31, %v1065_v39 }
 0x561   : > { %v1070_v44 = vsel %vm1069_vm8, %v1364_v31, %v1066_v42 }
 0x562   : > { %v1366_v45 = vpop.eup %1365  ;;  %v1081_v47 = vmul.f32 %v1070_v44, %v1047_v20 }
 0x563   : > { %v1072_v48 = vmul.f32 %v1366_v45, %v1060_v35  ;;  %vm1078_vm9 = vweird.f32 %v1366_v45 }
 0x564   : > { %v1087_v37 = vmul.f32 %v1335_v43, %v1081_v47  ;;  %vm1079_vm11 = vmor %vm1077_vm10, %vm1078_vm9 }
 0x565   : > { %v1073_v49 = vmul.f32 %v1366_v45, %v1072_v48 }
 0x566   : > { %v1093_v50 = vadd.f32 %v1336_v46, %v1087_v37 }
 0x567   : > { %v1074_v51 = vmul.f32 0.5, %v1073_v49 }
 0x568   : > { %1095 = vst.msk [vmem:[%s491_s3] sm:$0xff] %vm533_vm0, %v1093_v50 }
 0x569   : > { %v1075_v53 = vsub.f32 1.5, %v1074_v51 }
 0x56b   : > { %v1076_v54 = vmul.f32 %v1366_v45, %v1075_v53 }
 0x56d   : > { %v1080_v55 = vsel %vm1079_vm11, %v1366_v45, %v1076_v54 }
 0x56e   : > { %v1082_v56 = vmul.f32 %v1080_v55, %v1048_v25 }
 0x570   : > { %v1088_v57 = vmul.f32 %v1335_v43, %v1082_v56 }
 0x572   : > { %v1094_v52 = vadd.f32 %v1336_v46, %v1088_v57 }
 0x574   : > { %1096 = vst.msk [vmem:[%s491_s3 + $0x8] sm:$0xff] %vm533_vm0, %v1094_v52 }
 0x575   : > { %1394 = shalt.err (!%p1391_p3)
}
 0x576   : > { %s1433_s0 = smov 128   ;;  %s1434_s3 = smov 8  }
 0x577   : > { %1283 = dma.vmem_to_hbm [thread:$0]  (%p1548_p5), %s1116_s20, 256, %s1118_s25, %s1098_s17, %s1433_s0, %s1433_s0, %s1434_s3  }
 0x578 PF: > { %p1289_p4 = scmp.ge.s32.totalorder %s1429_s16, 2  ;;  %s1135_s15 = sand.u32 1, %s1417_s29  }
 0x579   : > { %s1136_s21 = scalar_lea.sflag [#allocation3], %s1135_s15 }
 0x57a   : > { %p1286_p7 = pnand %p1289_p4, %p1552_p6 }
 0x57c   : > { %p1287_p8 = pneg %p1286_p7 }
 0x57e   : > { %1412 = dma.done.wait (%p1287_p8), %s1136_s21, 256  }
 0x57f   : > { %1414 = vsyncadd (%p1287_p8), %s1136_s21, 4294967040  ;;  %s1807_s26 = sld [smem:[#allocation5_spill]]  ;;  %p25_p9 = scmp.ge.s32.totalorder %s1535_s19, 4  }
 0x580   : > { %s1808_s15 = sld [smem:[#allocation6_spill]]  ;;  %s1809_s29 = smov %s1421_s30 }
 0x581   : > { %s1811_s16 = smov %s1535_s19  ;;  %27 = sbr.rel (!%p25_p9) target bundleno = 7 (0x7), region = 126 }
 0x585   : > { %s1810_s30 = smov %s1807_s26 }
 0x586   :  { %1150 = vsyncpa [#allocation3], 1 }
 0x587   :  { %1152 = vsyncpa [#allocation3 + $0x1], 1 }

</bundles_post_ra>
